<compile_context>
chip_gen: v7x
topology: tpu7x:2x2x1
jax: 0.10.0
libtpu: 0.0.40
codegen_flags: <defaults>
</compile_context>

<pallas_src>
import jax
import jax.numpy as jnp
from jax.experimental import pallas as pl
from jax.experimental.pallas import tpu as pltpu


# ----------------------------------------------------------------------------
# Kernel: per-channel broadcast scale of a lane-dense (tile_c, tile_s) tile.
# ----------------------------------------------------------------------------
def _ca_scale_kernel(att_ref, feat_ref, out_ref):
    # att_ref : (tile_c, 1)       f32 per-channel attention for this batch elem
    # feat_ref: (tile_c, tile_s)  feature tile (native dtype)
    # out_ref : (tile_c, tile_s)  same dtype as feat
    scale = att_ref[...]                              # (tile_c, 1), f32
    x = feat_ref[...].astype(jnp.float32)             # in-register upcast (v5e-safe)
    out_ref[...] = (x * scale).astype(out_ref.dtype)  # broadcast along lanes


# ----------------------------------------------------------------------------
# Tiling helper: largest block <= min(n, target) that is a multiple of
# `quantum`; full dim when n <= quantum (full dims are always legal).
# Ragged last blocks are handled by Pallas padding (grid uses pl.cdiv).
# ----------------------------------------------------------------------------
def _tile_dim(n, quantum, target):
    if n <= quantum:
        return n
    t = min(target, n)
    return max(quantum, (t // quantum) * quantum)


# ----------------------------------------------------------------------------
# Wrapper
# ----------------------------------------------------------------------------
def ca_layer(feat_nchw, deg, w1, w2, *, donate_feat=False):
    """feat_nchw: (B, C, H, W); deg: (B, C_in); w1: (C_mid, C_in); w2: (C_out, C_mid)."""
    B, C, H, W = feat_nchw.shape
    C_out, C_mid = w2.shape
    C_mid2, C_in = w1.shape
    assert C_mid == C_mid2 and deg.shape == (B, C_in) and C == C_out

    S = H * W
    feat3 = feat_nchw.reshape(B, C, S)                 # native dtype, no copy

    # Tiny attention chain (XLA, f32) — negligible vs. the feature-map stream.
    h = jnp.dot(deg.astype(jnp.float32), w1.astype(jnp.float32).T)   # (B, C_mid)
    h = h * jax.nn.sigmoid(h)                                        # SiLU
    att = jax.nn.sigmoid(jnp.dot(h, w2.astype(jnp.float32).T))       # (B, C)
    att3 = att.reshape(B, C, 1)

    itemsize = jnp.dtype(feat3.dtype).itemsize
    sub_q = 8 * max(1, 4 // itemsize)                  # 8 (f32), 16 (bf16), 32 (int8)
    # ~2 MiB feature tiles regardless of dtype; bounded VMEM on v7x's 64 MiB.
    tile_c = _tile_dim(C, sub_q, 256)
    tile_s = _tile_dim(S, 128, (2 * 1024 * 1024) // (256 * itemsize))
    grid = (B, pl.cdiv(C, tile_c), pl.cdiv(S, tile_s))

    cost = pl.CostEstimate(
        flops=B * C * S,
        transcendentals=0,
        bytes_accessed=2 * B * C * S * itemsize + B * C * 4,
    )

    out3 = pl.pallas_call(
        _ca_scale_kernel,
        out_shape=jax.ShapeDtypeStruct((B, C, S), feat3.dtype),
        grid=grid,
        in_specs=[
            pl.BlockSpec((None, tile_c, 1), lambda b, j, k: (b, j, 0)),       # att
            pl.BlockSpec((None, tile_c, tile_s), lambda b, j, k: (b, j, k)),  # feat tile
        ],
        out_specs=pl.BlockSpec((None, tile_c, tile_s), lambda b, j, k: (b, j, k)),
        compiler_params=pltpu.CompilerParams(
            dimension_semantics=("parallel", "parallel", "parallel")),
        cost_estimate=cost,
        input_output_aliases=({1: 0} if donate_feat else {}),
    )(att3, feat3)

    return out3.reshape(B, C, H, W)


# ----------------------------------------------------------------------------
# Pure-JAX reference (matches the PyTorch module)
# ----------------------------------------------------------------------------
def ca_layer_ref(feat, deg, w1, w2):
    h = deg @ w1.T                      # Conv2d(C_in, C_mid, 1, bias=False) on (B,C_in,1,1)
    h = h * jax.nn.sigmoid(h)           # SiLU
    att = jax.nn.sigmoid(h @ w2.T)      # Conv2d(C_mid, C_out, 1, bias=False) + Sigmoid
    return feat * att[:, :, None, None]


if __name__ == "__main__":
    key = jax.random.PRNGKey(0)
    kf, kd, k1, k2, kf2, kd2 = jax.random.split(key, 6)

    # --- main test: typical shapes, f32 -------------------------------------
    B, C, H, W = 2, 32, 16, 16
    reduction = 8
    C_mid = C // reduction

    feat = jax.random.normal(kf, (B, C, H, W), jnp.float32)   # x[0]
    deg = jax.random.normal(kd, (B, C), jnp.float32)          # x[1]
    # 1x1 conv weights in PyTorch (out, in) layout, spatial 1x1 dims dropped.
    w1 = jax.random.normal(k1, (C_mid, C), jnp.float32) * (1.0 / jnp.sqrt(C))
    w2 = jax.random.normal(k2, (C, C_mid), jnp.float32) * (1.0 / jnp.sqrt(C_mid))

    fn = jax.jit(ca_layer)
    out = jax.block_until_ready(fn(feat, deg, w1, w2))
    ref = ca_layer_ref(feat, deg, w1, w2)
    assert out.shape == (B, C, H, W) and out.dtype == jnp.float32
    assert jnp.allclose(out, ref, rtol=1e-4, atol=1e-5), float(jnp.max(jnp.abs(out - ref)))

    # --- bf16 test: native-dtype streaming, out dtype preserves feat dtype ---
    feat_bf16 = feat.astype(jnp.bfloat16)
    out_bf16 = jax.block_until_ready(fn(feat_bf16, deg, w1, w2))
    assert out_bf16.dtype == jnp.bfloat16 and out_bf16.shape == (B, C, H, W)
    ref_bf16 = ca_layer_ref(feat_bf16.astype(jnp.float32), deg, w1, w2)
    assert jnp.allclose(out_bf16.astype(jnp.float32), ref_bf16, rtol=3e-2, atol=3e-2)

    # --- ragged test: C not a multiple of 8, S not a multiple of 128 ---------
    B2, C2, H2, W2 = 1, 36, 12, 13
    C_mid2 = 6
    feat2 = jax.random.normal(kf2, (B2, C2, H2, W2), jnp.float32)
    deg2 = jax.random.normal(kd2, (B2, C2), jnp.float32)
    w1b = jax.random.normal(k1, (C_mid2, C2), jnp.float32) * (1.0 / jnp.sqrt(C2))
    w2b = jax.random.normal(k2, (C2, C_mid2), jnp.float32) * (1.0 / jnp.sqrt(C_mid2))
    out2 = jax.block_until_ready(jax.jit(ca_layer)(feat2, deg2, w1b, w2b))
    ref2 = ca_layer_ref(feat2, deg2, w1b, w2b)
    assert jnp.allclose(out2, ref2, rtol=1e-4, atol=1e-5), float(jnp.max(jnp.abs(out2 - ref2)))

    print("KERNEL_OK")
</pallas_src>

<mosaic_0001>
module attributes {stable_mosaic.version = 11 : i64} {
  func.func @_ca_scale_kernel(%arg0: i32, %arg1: i32, %arg2: i32, %arg3: memref<1x32x1xf32, #tpu.memory_space<vmem>>, %arg4: memref<1x32x256xf32, #tpu.memory_space<vmem>>, %arg5: memref<1x32x256xf32, #tpu.memory_space<vmem>>) attributes {dimension_semantics = [#tpu.dimension_semantics<parallel>, #tpu.dimension_semantics<parallel>, #tpu.dimension_semantics<parallel>], iteration_bounds = array<i64: 2, 1, 1>, scalar_prefetch = 0 : i64, scratch_operands = 0 : i64, tpu.core_type = #tpu.core_type<tc>, window_params = [{transform_indices = @transform_0, window_bounds = array<i64: 1, 32, 1>}, {transform_indices = @transform_1, window_bounds = array<i64: 1, 32, 256>}, {transform_indices = @transform_2, window_bounds = array<i64: 1, 32, 256>}]} {
    %c0 = arith.constant 0 : index
    %c0_0 = arith.constant 0 : index
    %c0_1 = arith.constant 0 : index
    %0 = vector.load %arg3[%c0, %c0_0, %c0_1] : memref<1x32x1xf32, #tpu.memory_space<vmem>>, vector<1x32x1xf32>
    %1 = vector.shape_cast %0 : vector<1x32x1xf32> to vector<32x1xf32>
    %c0_2 = arith.constant 0 : index
    %c0_3 = arith.constant 0 : index
    %c0_4 = arith.constant 0 : index
    %2 = vector.load %arg4[%c0_2, %c0_3, %c0_4] : memref<1x32x256xf32, #tpu.memory_space<vmem>>, vector<1x32x256xf32>
    %3 = vector.shape_cast %2 : vector<1x32x256xf32> to vector<32x256xf32>
    %4 = vector.broadcast %1 : vector<32x1xf32> to vector<32x256xf32>
    %5 = arith.mulf %3, %4 : vector<32x256xf32>
    %c0_5 = arith.constant 0 : index
    %c0_6 = arith.constant 0 : index
    %c0_7 = arith.constant 0 : index
    %6 = vector.load %arg5[%c0_5, %c0_6, %c0_7] : memref<1x32x256xf32, #tpu.memory_space<vmem>>, vector<1x32x256xf32>
    %7 = vector.shape_cast %6 : vector<1x32x256xf32> to vector<32x256xf32>
    %8 = vector.shape_cast %5 : vector<32x256xf32> to vector<1x32x256xf32>
    tpu.vector_store %arg5[%c0_5, %c0_6, %c0_7], %8 {strides = array<i32>} : memref<1x32x256xf32, #tpu.memory_space<vmem>>, vector<1x32x256xf32>,
    return
  }
  func.func @transform_0(%arg0: i32, %arg1: i32, %arg2: i32) -> (i32, i32, i32) {
    %c0_i32 = arith.constant 0 : i32
    %c0_i32_0 = arith.constant 0 : i32
    return %arg0, %arg1, %c0_i32 : i32, i32, i32
  }
  func.func @transform_1(%arg0: i32, %arg1: i32, %arg2: i32) -> (i32, i32, i32) {
    %c0_i32 = arith.constant 0 : i32
    return %arg0, %arg1, %arg2 : i32, i32, i32
  }
  func.func @transform_2(%arg0: i32, %arg1: i32, %arg2: i32) -> (i32, i32, i32) {
    %c0_i32 = arith.constant 0 : i32
    return %arg0, %arg1, %arg2 : i32, i32, i32
  }
}

</mosaic_0001>

<bundles_post_ra>
// kernel: ca_layer.1
= control target key start
LH: loop header
LB: loop body
LE: loop exit
PB: predicated region body
PF: predicated region fallthrough
CT: control target
= control target key end

     0   :  { %s522_s9 = smov 0   ;;  %s524_s10 = smov 0   ;;  %s558_s0 = inlined_call_operand.vmem [shape: f32[2,32,1], index: 0, kind: input, shape index: {}]   ;;  %s559_s1 = inlined_call_operand.vmem [shape: f32[2,32,256], index: 1, kind: input, shape index: {}]   ;;  %s560_s2 = inlined_call_operand.vmem [shape: f32[2,32,256], index: 2, kind: output, shape index: {}]  }
   0x1   :  { %s526_s11 = smov 0  }
   0x2 LB: > { %s31_s12 = sadd.s32 1, %s500_s10  ;;  %p443_p0 = scmp.ge.s32.totalorder %s504_s11, 1  ;;  %s504_s11 = sphi %s526_s11, %s12_s11   ;;  %s500_s10 = sphi %s524_s10, %s562_s10   ;;  %s496_s9 = sphi %s522_s9, %s561_s9  }
   0x3   : > { %p33_p1 = scmp.ge.s32.totalorder %s31_s12, 2  ;;  %p167_p2 = scmp.lt.s32.totalorder %s504_s11, 3 }
   0x5   : > { %s564_s12 = smov (%p33_p1, %s31_s12), 0  ;;  %p168_p3 = pnand %p443_p0, %p167_p2 }
   0x6   : > { %p217_p4 = scmp.lt.s32.totalorder (!%p168_p3), %s496_s9, 1  ;;  %v506_v0 = vmov (!%p168_p3), 0  }
   0x7   : > { %171 = sbr.rel (%p168_p3) target bundleno = 154 (0x9a), region = 28  ;;  %481 = vset.pattern.permute.xlu1 (!%p168_p3), %v506_v0  ;;  %480 = vset.pattern.permute.xlu0 (!%p168_p3), %v506_v0 }
   0xe   : > { %s566_s9 = smov (!%p217_p4, %s496_s9), 1 }
   0xf   : > { %s452_s13 = sshll.u32 %s566_s9, 5  ;;  %s453_s17 = sshll.u32 %s566_s9, 6 }
  0x10   : > { %s224_s16 = scalar_lea.vmem %s558_s0, %s452_s13  ;;  %s239_s20 = scalar_lea.vmem %s559_s1, %s453_s17 }
  0x11   : > { %v260_v1 = vld [vmem:[%s224_s16 + $0x10] sm:$0xff]  ;;  %v258_v2 = vld [vmem:[%s224_s16] sm:$0xff]  ;;  %v261_v3 = vld [vmem:[%s224_s16 + $0x18] sm:$0xff]  ;;  %s255_s23 = scalar_lea.vmem %s560_s2, %s453_s17 }
  0x12   : > { %282 = vperm.xlu1 %481, %v260_v1   ;;  %272 = vperm.xlu0 %480, %v258_v2   ;;  %v259_v4 = vld [vmem:[%s224_s16 + $0x8] sm:$0xff]  ;;  %v266_v5 = vld [vmem:[%s239_s20 + $0x20] sm:$0xff]  ;;  %v268_v15 = vld [vmem:[%s239_s20 + $0x30] sm:$0xff] }
  0x13   : > { %v267_v6 = vld [vmem:[%s239_s20 + $0x28] sm:$0xff]  ;;  %v262_v7 = vld [vmem:[%s239_s20] sm:$0xff]  ;;  %v269_v16 = vld [vmem:[%s239_s20 + $0x38] sm:$0xff] }
  0x14   : > { %v263_v8 = vld [vmem:[%s239_s20 + $0x8] sm:$0xff]  ;;  %v264_v17 = vld [vmem:[%s239_s20 + $0x10] sm:$0xff]  ;;  %v265_v18 = vld [vmem:[%s239_s20 + $0x18] sm:$0xff] }
  0x16   : > { %287 = vperm.xlu1 %481, %v261_v3   ;;  %277 = vperm.xlu0 %480, %v259_v4  }
  0x91   : > { %v283_v9 = vpop.permute.xlu1 %282  ;;  %v273_v10 = vpop.permute.xlu0 %272 }
  0x92   : > { %v294_v11 = vmul.f32 %v283_v9, %v266_v5  ;;  %v295_v12 = vmul.f32 %v283_v9, %v267_v6  ;;  %v290_v13 = vmul.f32 %v273_v10, %v262_v7  ;;  %v291_v14 = vmul.f32 %v273_v10, %v263_v8 }
  0x94   : > { %302 = vst [vmem:[%s255_s23 + $0x20] sm:$0xff] %v294_v11  ;;  %303 = vst [vmem:[%s255_s23 + $0x28] sm:$0xff] %v295_v12 }
  0x95   : > { %298 = vst [vmem:[%s255_s23] sm:$0xff] %v290_v13  ;;  %299 = vst [vmem:[%s255_s23 + $0x8] sm:$0xff] %v291_v14  ;;  %v288_v19 = vpop.permute.xlu1 %287  ;;  %v278_v20 = vpop.permute.xlu0 %277 }
  0x96   : > { %v296_v21 = vmul.f32 %v288_v19, %v268_v15  ;;  %v297_v22 = vmul.f32 %v288_v19, %v269_v16  ;;  %v292_v23 = vmul.f32 %v278_v20, %v264_v17  ;;  %v293_v24 = vmul.f32 %v278_v20, %v265_v18 }
  0x98   : > { %304 = vst [vmem:[%s255_s23 + $0x30] sm:$0xff] %v296_v21  ;;  %305 = vst [vmem:[%s255_s23 + $0x38] sm:$0xff] %v297_v22 }
  0x99   : > { %300 = vst [vmem:[%s255_s23 + $0x10] sm:$0xff] %v292_v23  ;;  %301 = vst [vmem:[%s255_s23 + $0x18] sm:$0xff] %v293_v24 }
  0x9a PF: > { %s12_s11 = sadd.s32 1, %s504_s11   ;;  %s561_s9 = smov %s500_s10 }
  0x9b   : > { %p9_p5 = scmp.ge.s32.totalorder %s12_s11, 4   ;;  %s562_s10 = smov %s564_s12 }
  0x9d   :  { %11 = sbr.rel (!%p9_p5) target bundleno = 2 (0x2), region = 61 }

</bundles_post_ra>
